<compile_context>
chip_gen: v5e
topology: v5e:2x2
jax: 0.10.0
libtpu: 0.0.40
codegen_flags: <defaults>
</compile_context>

<pallas_src>
import functools

import jax
import jax.numpy as jnp
from jax import lax
from jax.experimental import pallas as pl
from jax.experimental.pallas import tpu as pltpu

_EPS = 1e-12   # matches torch.nn.functional.normalize default eps
_LANE = 128

_VMEM = pl.BlockSpec(memory_space=pltpu.MemorySpace.VMEM)


def _lane_losses(slab):
    """Per-column translation / quaternion L2 losses.

    slab: (16, Np) f32 as documented above.  Returns (lx, lq), each (1, Np).
    """
    # translation: ||gt_t - est_t||_2 per column (3-row sublane reduce).
    dt = slab[8:11, :] - slab[0:3, :]                              # (3, Np)
    lx = jnp.sqrt(jnp.sum(dt * dt, axis=0, keepdims=True))         # (1, Np)

    # quaternion: ||normalize(gt_q) - normalize(est_q)||_2 per column.
    # q / max(||q||, eps) == q * rsqrt(max(||q||^2, eps^2))  (rsqrt -> EUP).
    qe = slab[3:7, :]                                              # (4, Np)
    qg = slab[11:15, :]                                            # (4, Np)
    inv_e = lax.rsqrt(jnp.maximum(jnp.sum(qe * qe, axis=0, keepdims=True),
                                  _EPS * _EPS))
    inv_g = lax.rsqrt(jnp.maximum(jnp.sum(qg * qg, axis=0, keepdims=True),
                                  _EPS * _EPS))
    dq = qg * inv_g - qe * inv_e                                   # (4, Np)
    lq = jnp.sqrt(jnp.sum(dq * dq, axis=0, keepdims=True))         # (1, Np)
    return lx, lq


def _reduce_kernel(slab_ref, out_ref):
    """Masked mean of (lx, lq).  out_ref: (1, 2) f32 -> [mean_lx, mean_lq]."""
    slab = slab_ref[...]
    lx, lq = _lane_losses(slab)
    m = (slab[7:8, :] > 0.0).astype(jnp.float32)                   # (1, Np)
    cnt = jnp.sum(m, axis=1, keepdims=True)                        # (1, 1)
    sums = jnp.concatenate(
        [jnp.sum(lx * m, axis=1, keepdims=True),
         jnp.sum(lq * m, axis=1, keepdims=True)], axis=1)          # (1, 2)
    # NOTE: an all-zero mask gives cnt == 0 -> NaN, matching torch's
    # .mean() over an empty selection (documented precondition: >=1 valid row).
    out_ref[...] = sums / cnt


def _per_row_kernel(slab_ref, out_ref):
    """Unreduced per-sample losses.  out_ref: (2, Np) -> row0 lx, row1 lq."""
    lx, lq = _lane_losses(slab_ref[...])
    out_ref[...] = jnp.concatenate([lx, lq], axis=0)               # lane-dense store


@functools.partial(jax.jit, static_argnums=(3,))
def _camera_pose_loss_impl(est_pose, gt_pose, mask_row, reduce):
    n = est_pose.shape[0]
    n_pad = max(_LANE, ((n + _LANE - 1) // _LANE) * _LANE)

    # Host-side (XLA) layout plumbing: build the single lane-dense input slab.
    slab = jnp.zeros((16, n_pad), jnp.float32)
    slab = slab.at[0:7, :n].set(est_pose.T)
    slab = slab.at[7, :n].set(mask_row)        # padded columns keep mask = 0
    slab = slab.at[8:15, :n].set(gt_pose.T)

    slab_bytes = 16 * n_pad * 4
    out_bytes = 2 * n_pad * 4
    cparams = pltpu.CompilerParams(
        vmem_limit_bytes=min(2 * (slab_bytes + out_bytes) + (1 << 20),
                             100 * 1024 * 1024))
    cost = pl.CostEstimate(flops=45 * n_pad,
                           transcendentals=4 * n_pad,
                           bytes_accessed=slab_bytes + out_bytes)

    if reduce:
        out = pl.pallas_call(
            _reduce_kernel,
            out_shape=jax.ShapeDtypeStruct((1, 2), jnp.float32),
            in_specs=[_VMEM],
            out_specs=_VMEM,
            compiler_params=cparams,
            cost_estimate=cost,
        )(slab)
        return out[0, 0], out[0, 1]
    else:
        out = pl.pallas_call(
            _per_row_kernel,
            out_shape=jax.ShapeDtypeStruct((2, n_pad), jnp.float32),
            in_specs=[_VMEM],
            out_specs=_VMEM,
            compiler_params=cparams,
            cost_estimate=cost,
        )(slab)
        return out[0, :n], out[1, :n]


class CameraPoseLoss:
    """JAX/Pallas equivalent of NopeSAC_Net CameraPoseLoss (self.norm == 2).

    No learned parameters; __call__(est_pose, gt_pose, reduce=True, mask=None).
    est_pose / gt_pose: [N, 7] (translation xyz + quaternion).
    """

    def __init__(self):
        self.norm = 2  # only L2 implemented (matches the module default)

    def __call__(self, est_pose, gt_pose, reduce=True, mask=None):
        est_pose = jnp.asarray(est_pose, jnp.float32)
        gt_pose = jnp.asarray(gt_pose, jnp.float32)
        n = est_pose.shape[0]
        if reduce:
            if mask is None:
                mask_row = jnp.ones((n,), jnp.float32)
            else:
                mask_row = jnp.asarray(mask, jnp.float32).reshape(n)
            return _camera_pose_loss_impl(est_pose, gt_pose, mask_row, True)
        else:
            # mask is ignored in the unreduced branch (as in the PyTorch code)
            dummy = jnp.zeros((n,), jnp.float32)
            return _camera_pose_loss_impl(est_pose, gt_pose, dummy, False)


if __name__ == "__main__":
    key = jax.random.PRNGKey(0)
    k1, k2, k3 = jax.random.split(key, 3)

    N = 8  # small batch; pose dim is fixed at 7 (3 translation + 4 quaternion)
    est_pose = jax.random.normal(k1, (N, 7), jnp.float32)
    gt_pose = jax.random.normal(k2, (N, 7), jnp.float32)
    mask = (jax.random.uniform(k3, (N,)) > 0.5).astype(jnp.float32)
    # guarantee at least one valid row so the masked mean is well-defined
    mask = mask.at[0].set(1.0)

    loss_fn = CameraPoseLoss()

    # reduce=True, no mask
    l_x, l_q = loss_fn(est_pose, gt_pose, reduce=True, mask=None)
    jax.block_until_ready((l_x, l_q))

    # reduce=True, with mask
    l_xm, l_qm = loss_fn(est_pose, gt_pose, reduce=True, mask=mask)
    jax.block_until_ready((l_xm, l_qm))

    # reduce=False
    l_xv, l_qv = loss_fn(est_pose, gt_pose, reduce=False)
    jax.block_until_ready((l_xv, l_qv))

    # lightweight pure-JAX reference check
    def _ref(est, gt):
        dt = gt[:, 0:3] - est[:, 0:3]
        lx = jnp.sqrt(jnp.sum(dt * dt, axis=1))
        qg = gt[:, 3:] / jnp.maximum(
            jnp.linalg.norm(gt[:, 3:], axis=1, keepdims=True), _EPS)
        qe = est[:, 3:] / jnp.maximum(
            jnp.linalg.norm(est[:, 3:], axis=1, keepdims=True), _EPS)
        lq = jnp.sqrt(jnp.sum((qg - qe) ** 2, axis=1))
        return lx, lq

    rlx, rlq = _ref(est_pose, gt_pose)
    assert jnp.allclose(l_x, rlx.mean(), atol=1e-5)
    assert jnp.allclose(l_q, rlq.mean(), atol=1e-5)
    m = mask > 0
    assert jnp.allclose(l_xm, rlx[m].mean(), atol=1e-5)
    assert jnp.allclose(l_qm, rlq[m].mean(), atol=1e-5)
    assert jnp.allclose(l_xv, rlx, atol=1e-5)
    assert jnp.allclose(l_qv, rlq, atol=1e-5)

    print("KERNEL_OK")
</pallas_src>

<mosaic_0001>
module attributes {stable_mosaic.version = 11 : i64} {
  func.func @_reduce_kernel(%arg0: memref<16x128xf32, #tpu.memory_space<vmem>>, %arg1: memref<1x2xf32, #tpu.memory_space<vmem>>) attributes {dimension_semantics = [], scalar_prefetch = 0 : i64, scratch_operands = 0 : i64, tpu.core_type = #tpu.core_type<tc>} {
    %c0 = arith.constant 0 : index
    %c0_0 = arith.constant 0 : index
    %0 = vector.load %arg0[%c0, %c0_0] : memref<16x128xf32, #tpu.memory_space<vmem>>, vector<16x128xf32>
    %1 = vector.extract_strided_slice %0 {offsets = [8, 0], sizes = [3, 128], strides = [1, 1]} : vector<16x128xf32> to vector<3x128xf32>
    %2 = vector.extract_strided_slice %0 {offsets = [0, 0], sizes = [3, 128], strides = [1, 1]} : vector<16x128xf32> to vector<3x128xf32>
    %3 = arith.subf %1, %2 : vector<3x128xf32>
    %4 = arith.mulf %3, %3 : vector<3x128xf32>
    %cst = arith.constant dense<0.000000e+00> : vector<128xf32>
    %5 = vector.multi_reduction <add>, %4, %cst [0] : vector<3x128xf32> to vector<128xf32>
    %6 = vector.shape_cast %5 : vector<128xf32> to vector<1x128xf32>
    %7 = math.sqrt %6 : vector<1x128xf32>
    %8 = vector.extract_strided_slice %0 {offsets = [3, 0], sizes = [4, 128], strides = [1, 1]} : vector<16x128xf32> to vector<4x128xf32>
    %9 = vector.extract_strided_slice %0 {offsets = [11, 0], sizes = [4, 128], strides = [1, 1]} : vector<16x128xf32> to vector<4x128xf32>
    %10 = arith.mulf %8, %8 : vector<4x128xf32>
    %cst_1 = arith.constant dense<0.000000e+00> : vector<128xf32>
    %11 = vector.multi_reduction <add>, %10, %cst_1 [0] : vector<4x128xf32> to vector<128xf32>
    %12 = vector.shape_cast %11 : vector<128xf32> to vector<1x128xf32>
    %cst_2 = arith.constant 1.000000e-24 : f32
    %13 = vector.broadcast %cst_2 : f32 to vector<1x128xf32>
    %14 = arith.maximumf %12, %13 : vector<1x128xf32>
    %15 = math.rsqrt %14 : vector<1x128xf32>
    %16 = arith.mulf %9, %9 : vector<4x128xf32>
    %cst_3 = arith.constant dense<0.000000e+00> : vector<128xf32>
    %17 = vector.multi_reduction <add>, %16, %cst_3 [0] : vector<4x128xf32> to vector<128xf32>
    %18 = vector.shape_cast %17 : vector<128xf32> to vector<1x128xf32>
    %cst_4 = arith.constant 1.000000e-24 : f32
    %19 = vector.broadcast %cst_4 : f32 to vector<1x128xf32>
    %20 = arith.maximumf %18, %19 : vector<1x128xf32>
    %21 = math.rsqrt %20 : vector<1x128xf32>
    %22 = vector.broadcast %21 : vector<1x128xf32> to vector<4x128xf32>
    %23 = arith.mulf %9, %22 : vector<4x128xf32>
    %24 = vector.broadcast %15 : vector<1x128xf32> to vector<4x128xf32>
    %25 = arith.mulf %8, %24 : vector<4x128xf32>
    %26 = arith.subf %23, %25 : vector<4x128xf32>
    %27 = arith.mulf %26, %26 : vector<4x128xf32>
    %cst_5 = arith.constant dense<0.000000e+00> : vector<128xf32>
    %28 = vector.multi_reduction <add>, %27, %cst_5 [0] : vector<4x128xf32> to vector<128xf32>
    %29 = vector.shape_cast %28 : vector<128xf32> to vector<1x128xf32>
    %30 = math.sqrt %29 : vector<1x128xf32>
    %31 = vector.extract_strided_slice %0 {offsets = [7, 0], sizes = [1, 128], strides = [1, 1]} : vector<16x128xf32> to vector<1x128xf32>
    %cst_6 = arith.constant 0.000000e+00 : f32
    %32 = vector.broadcast %cst_6 : f32 to vector<1x128xf32>
    %33 = arith.cmpf ogt, %31, %32 : vector<1x128xf32>
    %34 = arith.extui %33 : vector<1x128xi1> to vector<1x128xi32>
    %35 = arith.sitofp %34 : vector<1x128xi32> to vector<1x128xf32>
    %cst_7 = arith.constant dense<0.000000e+00> : vector<1xf32>
    %36 = vector.multi_reduction <add>, %35, %cst_7 [1] : vector<1x128xf32> to vector<1xf32>
    %37 = vector.shape_cast %36 : vector<1xf32> to vector<1x1xf32>
    %38 = arith.mulf %7, %35 : vector<1x128xf32>
    %cst_8 = arith.constant dense<0.000000e+00> : vector<1xf32>
    %39 = vector.multi_reduction <add>, %38, %cst_8 [1] : vector<1x128xf32> to vector<1xf32>
    %40 = vector.shape_cast %39 : vector<1xf32> to vector<1x1xf32>
    %41 = arith.mulf %30, %35 : vector<1x128xf32>
    %cst_9 = arith.constant dense<0.000000e+00> : vector<1xf32>
    %42 = vector.multi_reduction <add>, %41, %cst_9 [1] : vector<1x128xf32> to vector<1xf32>
    %43 = vector.shape_cast %42 : vector<1xf32> to vector<1x1xf32>
    %44 = tpu.concatenate %40, %43 in 1 : vector<1x1xf32>, vector<1x1xf32> -> vector<1x2xf32>
    %45 = vector.broadcast %37 : vector<1x1xf32> to vector<1x2xf32>
    %46 = arith.divf %44, %45 : vector<1x2xf32>
    %c0_10 = arith.constant 0 : index
    %c0_11 = arith.constant 0 : index
    %47 = vector.load %arg1[%c0_10, %c0_11] : memref<1x2xf32, #tpu.memory_space<vmem>>, vector<1x2xf32>
    tpu.vector_store %arg1[%c0_10, %c0_11], %46 {strides = array<i32>} : memref<1x2xf32, #tpu.memory_space<vmem>>, vector<1x2xf32>,
    return
  }
}

</mosaic_0001>

<bundles_post_ra>
// kernel: _camera_pose_loss_impl.1
= control target key start
LH: loop header
LB: loop body
LE: loop exit
PB: predicated region body
PF: predicated region fallthrough
CT: control target
= control target key end

     0   :  { %vm36_vm0 = vcmask 1043456   ;;  %vm106_vm2 = vcmask 1047559   ;;  %v153_v9 = vmov 0.0   ;;  %vm12_vm3 = vcmask 1042432   ;;  %s197_s0 = inlined_call_operand.vmem [shape: f32[16,128], index: 0, kind: input, shape index: {}]   ;;  %s198_s1 = inlined_call_operand.vmem [shape: f32[1,2], index: 1, kind: output, shape index: {}]  }
   0x1   :  { %v167_v0 = vld [vmem:[%s197_s0] sm:$0xff]  ;;  %v172_v1 = vld [vmem:[%s197_s0 + $0x8] sm:$0xff] }
   0x2   :  { %v55_v2 = vmul.f32 %v172_v1, %v172_v1  ;;  %v32_v3 = vmul.f32 %v167_v0, %v167_v0  ;;  %vm103_vm1 = vcmp.gt.f32.partialorder %v167_v0, 0.0  ;;  %v10_v11 = vsub.f32 %v172_v1, %v167_v0 }
   0x3   :  { %v181_v10 = vsel %vm103_vm1, 1.0, %v153_v9  ;;  %vm118_vm1 = vcmask 7168  }
   0x4   :  { %v57_v4 = vrot.slane %v55_v2, 3  ;;  %v34_v5 = vrot.slane %v32_v3, 3  ;;  %v107_v14 = vsel %vm106_vm2, %v181_v10, 0.0  ;;  %v11_v15 = vmul.f32 %v10_v11, %v10_v11 }
   0x5   :  { %108 = vadd.xlane.f32.xlu0 %v107_v14 }
   0x6   :  { %v59_v6 = vsel %vm36_vm0, %v57_v4, 0.0  ;;  %v37_v7 = vsel %vm36_vm0, %v34_v5, 0.0  ;;  %v13_v18 = vsel %vm12_vm3, %v11_v15, 0.0 }
   0x7   :  { %v60_v8 = vrot.slane %v59_v6, 4  ;;  %v38_v12 = vrot.slane %v37_v7, 4  ;;  %v14_v21 = vrot.slane %v13_v18, 4 }
   0x9   :  { %v61_v13 = vadd.f32 %v60_v8, %v59_v6  ;;  %v39_v16 = vadd.f32 %v38_v12, %v37_v7  ;;  %v15_v24 = vadd.f32 %v14_v21, %v13_v18 }
   0xb   :  { %v62_v17 = vrot.slane %v61_v13, 2  ;;  %v40_v19 = vrot.slane %v39_v16, 2  ;;  %v16_v27 = vrot.slane %v15_v24, 2 }
   0xd   :  { %v63_v20 = vadd.f32 %v62_v17, %v61_v13  ;;  %v41_v22 = vadd.f32 %v40_v19, %v39_v16  ;;  %v17_v30 = vadd.f32 %v16_v27, %v15_v24 }
   0xf   :  { %v64_v23 = vrot.slane %v63_v20, 1  ;;  %v42_v25 = vrot.slane %v41_v22, 1  ;;  %v18_v32 = vrot.slane %v17_v30, 1 }
  0x11   :  { %v65_v26 = vadd.f32 %v64_v23, %v63_v20  ;;  %v43_v28 = vadd.f32 %v42_v25, %v41_v22  ;;  %v19_v33 = vadd.f32 %v18_v32, %v17_v30 }
  0x13   :  { %v66_v29 = vmax.f32 %v65_v26, 1e-24  ;;  %v44_v31 = vmax.f32 %v43_v28, 1e-24  ;;  %vm27_vm10 = vcmp.eq.f32.partialorder %v19_v33, inf  ;;  %v30_v60 = vand.u32 2147483648, %v19_v33 }
  0x14   :  { %vm29_vm11 = vcmp.eq.f32.partialorder %v19_v33, 0.0 }
  0x15   :  { %143 = vrsqrt.f32 %v66_v29  ;;  %vm73_vm4 = vweird.f32 %v66_v29  ;;  %vm51_vm6 = vweird.f32 %v44_v31 }
  0x16   :  { %145 = vrsqrt.f32 %v44_v31 }
  0x17   :  { %147 = vrsqrt.f32 %v19_v33 }
  0x1b   :  { %v144_v34 = vpop.eup %143 }
  0x1c   :  { %v146_v35 = vpop.eup %145  ;;  %v68_v36 = vmul.f32 %v144_v34, %v66_v29  ;;  %vm74_vm5 = vweird.f32 %v144_v34 }
  0x1d   :  { %v46_v37 = vmul.f32 %v146_v35, %v44_v31  ;;  %vm52_vm7 = vweird.f32 %v146_v35  ;;  %v148_v43 = vpop.eup %147  ;;  %vm75_vm8 = vmor %vm73_vm4, %vm74_vm5 }
  0x1e   :  { %v69_v38 = vmul.f32 %v144_v34, %v68_v36  ;;  %vm53_vm9 = vmor %vm51_vm6, %vm52_vm7  ;;  %v21_v46 = vmul.f32 %v148_v43, %v19_v33 }
  0x1f   :  { %v47_v39 = vmul.f32 %v146_v35, %v46_v37 }
  0x20   :  { %v70_v40 = vmul.f32 0.5, %v69_v38  ;;  %v22_v49 = vmul.f32 %v148_v43, %v21_v46 }
  0x21   :  { %v48_v41 = vmul.f32 0.5, %v47_v39 }
  0x22   :  { %v71_v42 = vsub.f32 1.5, %v70_v40  ;;  %v23_v53 = vmul.f32 0.5, %v22_v49 }
  0x23   :  { %v49_v44 = vsub.f32 1.5, %v48_v41 }
  0x24   :  { %v72_v45 = vmul.f32 %v144_v34, %v71_v42  ;;  %v24_v55 = vsub.f32 1.5, %v23_v53 }
  0x25   :  { %v50_v47 = vmul.f32 %v146_v35, %v49_v44 }
  0x26   :  { %v76_v48 = vsel %vm75_vm8, %v144_v34, %v72_v45  ;;  %v25_v57 = vmul.f32 %v148_v43, %v24_v55 }
  0x27   :  { %v77_v50 = vmul.f32 %v76_v48, %v172_v1  ;;  %v54_v51 = vsel %vm53_vm9, %v146_v35, %v50_v47 }
  0x28   :  { %v78_v52 = vmul.f32 %v54_v51, %v167_v0  ;;  %v26_v59 = vmul.f32 %v25_v57, %v19_v33 }
  0x2a   :  { %v79_v54 = vsub.f32 %v77_v50, %v78_v52  ;;  %v28_v62 = vsel %vm27_vm10, %v19_v33, %v26_v59 }
  0x2b   :  { %v31_v2 = vsel %vm29_vm11, %v30_v60, %v28_v62 }
  0x2c   :  { %v80_v56 = vmul.f32 %v79_v54, %v79_v54  ;;  %v110_v1 = vmul.f32 %v181_v10, %v31_v2 }
  0x2e   :  { %v82_v58 = vrot.slane %v80_v56, 3  ;;  %v111_v0 = vsel %vm106_vm2, %v110_v1, 0.0 }
  0x2f   :  { %112 = vadd.xlane.f32.xlu0 %v111_v0 }
  0x30   :  { %v84_v61 = vsel %vm36_vm0, %v82_v58, 0.0 }
  0x31   :  { %v85_v63 = vrot.slane %v84_v61, 4 }
  0x33   :  { %v86_v3 = vadd.f32 %v85_v63, %v84_v61 }
  0x35   :  { %v87_v4 = vrot.slane %v86_v3, 2 }
  0x37   :  { %v88_v5 = vadd.f32 %v87_v4, %v86_v3 }
  0x39   :  { %v89_v6 = vrot.slane %v88_v5, 1 }
  0x3b   :  { %v90_v7 = vadd.f32 %v89_v6, %v88_v5 }
  0x3d   :  { %149 = vrsqrt.f32 %v90_v7  ;;  %vm98_vm12 = vcmp.eq.f32.partialorder %v90_v7, inf  ;;  %v101_v15 = vand.u32 2147483648, %v90_v7  ;;  %vm100_vm13 = vcmp.eq.f32.partialorder %v90_v7, 0.0 }
  0x43   :  { %v150_v8 = vpop.eup %149 }
  0x44   :  { %v92_v9 = vmul.f32 %v150_v8, %v90_v7 }
  0x46   :  { %v93_v11 = vmul.f32 %v150_v8, %v92_v9 }
  0x48   :  { %v94_v12 = vmul.f32 0.5, %v93_v11 }
  0x4a   :  { %v95_v13 = vsub.f32 1.5, %v94_v12 }
  0x4c   :  { %v96_v14 = vmul.f32 %v150_v8, %v95_v13 }
  0x4e   :  { %v97_v16 = vmul.f32 %v96_v14, %v90_v7 }
  0x50   :  { %v99_v17 = vsel %vm98_vm12, %v90_v7, %v97_v16 }
  0x51   :  { %v102_v18 = vsel %vm100_vm13, %v101_v15, %v99_v17 }
  0x52   :  { %v114_v19 = vmul.f32 %v181_v10, %v102_v18 }
  0x54   :  { %v115_v20 = vsel %vm106_vm2, %v114_v19, 0.0  ;;  %vm135_vm2 = vcmask 15367  }
  0x55   :  { %116 = vadd.xlane.f32.xlu1 %v115_v20 }
  0x78   :  { %v109_v21 = vpop.xlane.xlu0 %108 }
  0x79   :  { %151 = vrcp.f32 %v109_v21  ;;  %vm125_vm14 = vweird.f32 %v109_v21  ;;  %v131_v26 = vand.u32 2147483648, %v109_v21  ;;  %v129_v28 = vand.u32 2147483647, %v109_v21 }
  0x7b   :  { %v132_v29 = vor.u32 1.1754944e-38, %v131_v26  ;;  %vm130_vm3 = vcmp.eq.f32.partialorder %v129_v28, 8.507059e+37 }
  0x7f   :  { %v152_v22 = vpop.eup %151 }
  0x80   :  { %v121_v23 = vmul.f32 %v152_v22, %v109_v21  ;;  %vm126_vm15 = vweird.f32 %v152_v22 }
  0x81   :  { %vm127_vm0 = vmor %vm125_vm14, %vm126_vm15 }
  0x82   :  { %v122_v24 = vsub.f32 1.0, %v121_v23 }
  0x84   :  { %v123_v25 = vmul.f32 %v152_v22, %v122_v24 }
  0x86   :  { %v124_v27 = vadd.f32 %v152_v22, %v123_v25 }
  0x88   :  { %v128_v30 = vsel %vm127_vm0, %v152_v22, %v124_v27 }
  0x89   :  { %v133_v32 = vsel %vm130_vm3, %v132_v29, %v128_v30 }
  0xa2   :  { %v113_v10 = vpop.xlane.xlu0 %112 }
  0xc8   :  { %v117_v31 = vpop.xlane.xlu1 %116 }
  0xc9   :  { %v119_v33 = vsel %vm118_vm1, %v113_v10, %v117_v31 }
  0xca   :  { %v134_v34 = vmul.f32 %v133_v32, %v119_v33 }
  0xcc   :  { %136 = vst.msk [vmem:[%s198_s1 - $0x7] sm:$0x80] %vm135_vm2, %v134_v34 }

</bundles_post_ra>
